<compile_context>
chip_gen: v5e
topology: v5e:2x2
jax: 0.10.0
libtpu: 0.0.40
codegen_flags: <defaults>
</compile_context>

<pallas_src>
import functools
import math

import jax
import jax.numpy as jnp
from jax import lax
from jax.experimental import pallas as pl
from jax.experimental.pallas import tpu as pltpu


# --------------------------------------------------------------------------
# Linear kernel: y = x @ W + b, tiled over rows (cdiv grid, edge blocks clipped)
# --------------------------------------------------------------------------
def _linear_kernel(x_ref, w_ref, b_ref, o_ref):
    acc = jnp.dot(x_ref[...], w_ref[...], preferred_element_type=jnp.float32)
    o_ref[...] = (acc + b_ref[...].astype(jnp.float32)).astype(o_ref.dtype)


def _linear(x2d, w, b, *, tile_m=512):
    """x2d: (M, K), w: (K, N), b: (N,)  ->  (M, N)."""
    M, K = x2d.shape
    N = w.shape[1]
    # Full-row block if it fits, otherwise a large sublane-aligned tile with a
    # cdiv grid (no divisor search, no pathological tiny tiles).
    tm = M if M <= tile_m else tile_m          # tile_m is a multiple of 8
    grid = (pl.cdiv(M, tm),)
    return pl.pallas_call(
        _linear_kernel,
        out_shape=jax.ShapeDtypeStruct((M, N), x2d.dtype),
        grid_spec=pltpu.PrefetchScalarGridSpec(
            num_scalar_prefetch=0,
            grid=grid,
            in_specs=[
                pl.BlockSpec((tm, K), lambda i: (i, 0)),
                pl.BlockSpec((K, N), lambda i: (0, 0)),
                pl.BlockSpec((1, N), lambda i: (0, 0)),
            ],
            out_specs=pl.BlockSpec((tm, N), lambda i: (i, 0)),
        ),
        compiler_params=pltpu.CompilerParams(
            dimension_semantics=("parallel",)),
    )(x2d, w, b.reshape(1, N))


# --------------------------------------------------------------------------
# Attention kernel: one (batch*head, q-tile) per grid step.
# Full K/V for that head lives in VMEM, so a plain (non-online) stable softmax
# is exact. Rows are independent, so clipped edge q-tiles are safe.
# --------------------------------------------------------------------------
def _attn_kernel(q_ref, k_ref, v_ref, o_ref, *, scale):
    q = q_ref[0].astype(jnp.float32)          # (tq, dk)
    k = k_ref[0].astype(jnp.float32)          # (nk, dk)
    v = v_ref[0].astype(jnp.float32)          # (nk, dv)
    # s = (q @ k^T) * scale   -- contract over d_k on the MXU
    s = lax.dot_general(q, k, (((1,), (1,)), ((), ())),
                        preferred_element_type=jnp.float32) * scale
    m = jnp.max(s, axis=-1, keepdims=True)
    e = jnp.exp(s - m)
    p = e / jnp.sum(e, axis=-1, keepdims=True)
    o = jnp.dot(p, v, preferred_element_type=jnp.float32)
    o_ref[0] = o.astype(o_ref.dtype)


def _attention(q, k, v, scale):
    """q: (BH, nq, dk), k: (BH, nk, dk), v: (BH, nk, dv) -> (BH, nq, dv)."""
    BH, nq, dk = q.shape
    _, nk, dv = v.shape
    tq = nq if nq <= 128 else 128              # full seq or 128-row q tiles
    grid = (BH, pl.cdiv(nq, tq))
    kernel = functools.partial(_attn_kernel, scale=scale)
    return pl.pallas_call(
        kernel,
        out_shape=jax.ShapeDtypeStruct((BH, nq, dv), q.dtype),
        grid_spec=pltpu.PrefetchScalarGridSpec(
            num_scalar_prefetch=0,
            grid=grid,
            in_specs=[
                pl.BlockSpec((1, tq, dk), lambda i, j: (i, j, 0)),
                pl.BlockSpec((1, nk, dk), lambda i, j: (i, 0, 0)),
                pl.BlockSpec((1, nk, dv), lambda i, j: (i, 0, 0)),
            ],
            out_specs=pl.BlockSpec((1, tq, dv), lambda i, j: (i, j, 0)),
        ),
        compiler_params=pltpu.CompilerParams(
            dimension_semantics=("parallel", "parallel")),
    )(q, k, v)


# --------------------------------------------------------------------------
# Module wrapper (parameters + forward), mirroring the PyTorch SelfAttention
# --------------------------------------------------------------------------
class SelfAttentionPallas:
    def __init__(self, d_model, d_k, d_v, h, attn_pdrop=0.1, resid_pdrop=0.1,
                 *, key, init_std=0.001, dtype=jnp.float32):
        assert d_k % h == 0
        self.d_model = d_model
        # Matches the PyTorch module: per-head dims derived from d_model // h.
        self.d_k = d_model // h
        self.d_v = d_model // h
        self.h = h
        self.attn_pdrop = attn_pdrop
        self.resid_pdrop = resid_pdrop

        ks = jax.random.split(key, 4)

        def mk_w(k, in_f, out_f):
            return (init_std * jax.random.normal(k, (in_f, out_f))).astype(dtype)

        # Weights stored as (in, out) so the kernel computes x @ W + b.
        self.wq = mk_w(ks[0], d_model, h * self.d_k)
        self.wk = mk_w(ks[1], d_model, h * self.d_k)
        self.wv = mk_w(ks[2], d_model, h * self.d_v)
        self.wo = mk_w(ks[3], h * self.d_v, d_model)
        self.bq = jnp.zeros((h * self.d_k,), dtype)
        self.bk = jnp.zeros((h * self.d_k,), dtype)
        self.bv = jnp.zeros((h * self.d_v,), dtype)
        self.bo = jnp.zeros((d_model,), dtype)

        # Fused QKV projection: one matmul instead of three.
        self.w_qkv = jnp.concatenate([self.wq, self.wk, self.wv], axis=1)
        self.b_qkv = jnp.concatenate([self.bq, self.bk, self.bv], axis=0)

    def __call__(self, x, attention_mask=None, attention_weights=None):
        # TODO(synk): optional attention_mask / attention_weights and train-mode
        #             dropout (attn_drop / resid_drop) are not implemented; this
        #             is the inference (eval-mode, mask=None) forward pass.
        assert attention_mask is None and attention_weights is None
        b_s, nq, c = x.shape
        assert c == self.d_model
        M = b_s * nq

        # 1) fused QKV projection (Pallas linear kernel)
        x2d = x.reshape(M, c)
        qkv = _linear(x2d, self.w_qkv, self.b_qkv)            # (M, 3*h*dk)

        # 2) layout plumbing (pure reshape/transpose, outside kernels)
        qkv = qkv.reshape(b_s, nq, 3, self.h, self.d_k)
        qkv = qkv.transpose(2, 0, 3, 1, 4)                    # (3, b, h, nq, dk)
        BH = b_s * self.h
        q = qkv[0].reshape(BH, nq, self.d_k)
        k = qkv[1].reshape(BH, nq, self.d_k)
        v = qkv[2].reshape(BH, nq, self.d_v)

        # 3) scaled-dot-product attention (Pallas attention kernel)
        scale = 1.0 / math.sqrt(self.d_k)
        o = _attention(q, k, v, scale)                        # (BH, nq, dv)

        # 4) merge heads + output projection (Pallas linear kernel)
        o = (o.reshape(b_s, self.h, nq, self.d_v)
               .transpose(0, 2, 1, 3)
               .reshape(M, self.h * self.d_v))
        out = _linear(o, self.wo, self.bo)                    # (M, d_model)
        return out.reshape(b_s, nq, self.d_model)


# --------------------------------------------------------------------------
# Pure-JAX reference (mirrors the PyTorch forward, eval mode)
# --------------------------------------------------------------------------
def _ref_forward(x, mod):
    b_s, nq, _ = x.shape
    h, d_k, d_v = mod.h, mod.d_k, mod.d_v
    hp = "highest"
    q = jnp.dot(x, mod.wq, precision=hp) + mod.bq
    k = jnp.dot(x, mod.wk, precision=hp) + mod.bk
    v = jnp.dot(x, mod.wv, precision=hp) + mod.bv
    q = q.reshape(b_s, nq, h, d_k).transpose(0, 2, 1, 3)
    k = k.reshape(b_s, nq, h, d_k).transpose(0, 2, 1, 3)
    v = v.reshape(b_s, nq, h, d_v).transpose(0, 2, 1, 3)
    att = jnp.einsum("bhqd,bhkd->bhqk", q, k, precision=hp) / math.sqrt(d_k)
    att = jax.nn.softmax(att, axis=-1)
    out = jnp.einsum("bhqk,bhkd->bhqd", att, v, precision=hp)
    out = out.transpose(0, 2, 1, 3).reshape(b_s, nq, h * d_v)
    return jnp.dot(out, mod.wo, precision=hp) + mod.bo


if __name__ == "__main__":
    key = jax.random.PRNGKey(0)
    kx, kp = jax.random.split(key)

    # Small shapes: batch=2, seq (nx = H*W) = 16, d_model=32, heads=4 (d_k=8)
    b_s, nq, d_model, h = 2, 16, 32, 4
    x = jax.random.normal(kx, (b_s, nq, d_model), dtype=jnp.float32)

    # init_std=0.1 (instead of the module's 0.001) so softmax is non-degenerate
    # and the numerical check actually exercises the kernel math.
    mod = SelfAttentionPallas(d_model, d_model, d_model, h, key=kp, init_std=0.1)

    out = mod(x)
    out = jax.block_until_ready(out)
    assert out.shape == (b_s, nq, d_model)

    ref = _ref_forward(x, mod)
    err = float(jnp.max(jnp.abs(out - ref)))
    assert jnp.allclose(out, ref, atol=5e-3, rtol=5e-3), f"max abs err {err}"

    print("KERNEL_OK")
</pallas_src>

<mosaic_0001>
module attributes {stable_mosaic.version = 11 : i64} {
  func.func @_linear_kernel(%arg0: i32, %arg1: memref<32x32xf32, #tpu.memory_space<vmem>>, %arg2: memref<32x96xf32, #tpu.memory_space<vmem>>, %arg3: memref<1x96xf32, #tpu.memory_space<vmem>>, %arg4: memref<32x96xf32, #tpu.memory_space<vmem>>) attributes {dimension_semantics = [#tpu.dimension_semantics<parallel>], iteration_bounds = array<i64: 1>, scalar_prefetch = 0 : i64, scratch_operands = 0 : i64, tpu.core_type = #tpu.core_type<tc>, window_params = [{transform_indices = @transform_0, window_bounds = array<i64: 32, 32>}, {pipeline_mode = #tpu.pipeline_mode<synchronous>, transform_indices = @transform_1, window_bounds = array<i64: 32, 96>}, {pipeline_mode = #tpu.pipeline_mode<synchronous>, transform_indices = @transform_2, window_bounds = array<i64: 1, 96>}, {transform_indices = @transform_3, window_bounds = array<i64: 32, 96>}]} {
    %c0 = arith.constant 0 : index
    %c0_0 = arith.constant 0 : index
    %0 = vector.load %arg1[%c0, %c0_0] : memref<32x32xf32, #tpu.memory_space<vmem>>, vector<32x32xf32>
    %c0_1 = arith.constant 0 : index
    %c0_2 = arith.constant 0 : index
    %1 = vector.load %arg2[%c0_1, %c0_2] : memref<32x96xf32, #tpu.memory_space<vmem>>, vector<32x96xf32>
    %cst = arith.constant dense<0.000000e+00> : vector<32x96xf32>
    %2 = tpu.matmul %0, %1, %cst {dimension_numbers = #tpu.dot_dimension_numbers<[1], [0], [0], [1], [0, 0, 1, 1], [], []>} : vector<32x32xf32>, vector<32x96xf32>, vector<32x96xf32> -> vector<32x96xf32>
    %c0_3 = arith.constant 0 : index
    %c0_4 = arith.constant 0 : index
    %3 = vector.load %arg3[%c0_3, %c0_4] : memref<1x96xf32, #tpu.memory_space<vmem>>, vector<1x96xf32>
    %4 = vector.broadcast %3 : vector<1x96xf32> to vector<32x96xf32>
    %5 = arith.addf %2, %4 : vector<32x96xf32>
    %c0_5 = arith.constant 0 : index
    %c0_6 = arith.constant 0 : index
    %6 = vector.load %arg4[%c0_5, %c0_6] : memref<32x96xf32, #tpu.memory_space<vmem>>, vector<32x96xf32>
    tpu.vector_store %arg4[%c0_5, %c0_6], %5 {strides = array<i32>} : memref<32x96xf32, #tpu.memory_space<vmem>>, vector<32x96xf32>,
    return
  }
  func.func @transform_0(%arg0: i32) -> (i32, i32) {
    %c0_i32 = arith.constant 0 : i32
    %c0_i32_0 = arith.constant 0 : i32
    return %arg0, %c0_i32 : i32, i32
  }
  func.func @transform_1(%arg0: i32) -> (i32, i32) {
    %c0_i32 = arith.constant 0 : i32
    %c0_i32_0 = arith.constant 0 : i32
    %c0_i32_1 = arith.constant 0 : i32
    return %c0_i32, %c0_i32_0 : i32, i32
  }
  func.func @transform_2(%arg0: i32) -> (i32, i32) {
    %c0_i32 = arith.constant 0 : i32
    %c0_i32_0 = arith.constant 0 : i32
    %c0_i32_1 = arith.constant 0 : i32
    return %c0_i32, %c0_i32_0 : i32, i32
  }
  func.func @transform_3(%arg0: i32) -> (i32, i32) {
    %c0_i32 = arith.constant 0 : i32
    %c0_i32_0 = arith.constant 0 : i32
    return %arg0, %c0_i32 : i32, i32
  }
}

</mosaic_0001>

<bundles_post_ra>
// kernel: tpu_custom_call.1
= control target key start
LH: loop header
LB: loop body
LE: loop exit
PB: predicated region body
PF: predicated region fallthrough
CT: control target
= control target key end

     0   :  { %8 = vsyncpa [#allocation3], 0  ;;  %s276_s0 = inlined_call_operand.hbm [shape: f32[32,32], index: 0, kind: input, shape index: {}]   ;;  %s277_s1 = inlined_call_operand.hbm [shape: f32[32,96], index: 1, kind: input, shape index: {}]   ;;  %s278_s2 = inlined_call_operand.vmem [shape: f32[1,96], index: 2, kind: input, shape index: {}]   ;;  %s279_s3 = inlined_call_operand.hbm [shape: f32[32,96], index: 3, kind: output, shape index: {}]  }
   0x1   :  { %9 = vsyncpa [#allocation6], 0 }
   0x2   :  { %10 = vsyncpa [#allocation4], 0  ;;  %s15_s14 = sshll.u32 %s276_s0, 4  ;;  %s226_s15 = smov [#allocation2]   ;;  %s16_s14 = int_to_ptr.hbm [resolvable:$true] %s15_s14 }
   0x3   :  { %s17_s16 = sshll.u32 %s226_s15, 4  ;;  %s28_s19 = sshll.u32 %s277_s1, 4  ;;  %s18_s16 = int_to_ptr.vmem [resolvable:$true] %s17_s16  ;;  %s29_s19 = int_to_ptr.hbm [resolvable:$true] %s28_s19 }
   0x4   :  { %s227_s20 = smov 128   ;;  %s228_s21 = smov 8  }
   0x5   :  { %23 = dma.hbm_to_vmem [thread:$0]  %s16_s14, 512, %s18_s16, [#allocation3], %s227_s20, %s227_s20, %s228_s21  }
   0x6   :  { %s229_s22 = smov [#allocation5]  }
   0x7   :  { %s30_s23 = sshll.u32 %s229_s22, 4  ;;  %s31_s23 = int_to_ptr.vmem [resolvable:$true] %s30_s23 }
   0x8   :  { %36 = dma.hbm_to_vmem [thread:$0]  %s29_s19, 512, %s31_s23, [#allocation6], %s227_s20, %s227_s20, %s228_s21  }
   0x9   :  { %220 = dma.done.wait [#allocation3], 512  }
   0xa   :  { %221 = vsyncadd [#allocation3], 4294966784 }
   0xb   :  { %222 = dma.done.wait [#allocation6], 512  }
   0xc   :  { %223 = vsyncadd [#allocation6], 4294966784  ;;  %v54_v0 = vld [vmem:[#allocation5 + $0x18] sm:$0xff]  ;;  %v53_v1 = vld [vmem:[#allocation5 + $0x10] sm:$0xff]  ;;  %vm59_vm0 = vcmask 261120   ;;  %vm101_vm1 = vcmask 785408  }
   0xd   :  { %131 = vmatpush.msra.mxu2 %v54_v0  ;;  %132 = vmatpush.msra.mxu3 %v54_v0  ;;  %v52_v2 = vld [vmem:[#allocation5 + $0x8] sm:$0xff]  ;;  %v51_v3 = vld [vmem:[#allocation5] sm:$0xff]  ;;  %v49_v4 = vld [vmem:[#allocation2 + $0x10] sm:$0xff]  ;;  %s230_s24 = smov [#allocation7]   ;;  %s112_s28 = sshll.u32 %s279_s3, 4  ;;  %s113_s28 = int_to_ptr.hbm [resolvable:$true] %s112_s28 }
   0xe   :  { %84 = vmatpush.msra.mxu0 %v54_v0  ;;  %130 = vmatpush.msra.mxu1 %v54_v0  ;;  %v50_v5 = vld [vmem:[#allocation2 + $0x18] sm:$0xff]  ;;  %v47_v6 = vld [vmem:[#allocation2] sm:$0xff]  ;;  %v48_v7 = vld [vmem:[#allocation2 + $0x8] sm:$0xff]  ;;  %s110_s25 = sshll.u32 %s230_s24, 4  ;;  %s111_s25 = int_to_ptr.vmem [resolvable:$true] %s110_s25 }
   0xf   :  { %134 = vmatpush.msra.mxu2 %v53_v1  ;;  %135 = vmatpush.msra.mxu3 %v53_v1  ;;  %v147_v8 = vld [vmem:[%s278_s2] ss:$0 sm:$0xff] }
  0x10   :  { %85 = vmatpush.msra.mxu0 %v53_v1  ;;  %133 = vmatpush.msra.mxu1 %v53_v1 }
  0x11   :  { %137 = vmatpush.msra.mxu2 %v52_v2  ;;  %138 = vmatpush.msra.mxu3 %v52_v2 }
  0x12   :  { %86 = vmatpush.msra.mxu0 %v52_v2  ;;  %136 = vmatpush.msra.mxu1 %v52_v2 }
  0x13   :  { %140 = vmatpush.msra.mxu2 %v51_v3  ;;  %141 = vmatpush.msra.mxu3 %v51_v3 }
  0x14   :  { %128 = vmatmul.msk.f32.vlgmr.msra.gmra.mxu2 %vm59_vm0, %v49_v4  ;;  %129 = vmatmul.msk.f32.vlgmr.msra.gmra.mxu3 %vm59_vm0, %v50_v5 }
  0x15   :  { %87 = vmatpush.msra.mxu0 %v51_v3  ;;  %139 = vmatpush.msra.mxu1 %v51_v3 }
  0x16   :  { %126 = vmatmul.msk.f32.vlgmr.msra.gmra.mxu0 %vm59_vm0, %v47_v6  ;;  %127 = vmatmul.msk.f32.vlgmr.msra.gmra.mxu1 %vm59_vm0, %v48_v7 }
  0x93   :  { %v89_v9 = vpop.f32.mrf.mxu0  ;;  %v92_v10 = vpop.f32.mrf.mxu1 }
  0x94   :  { %v90_v11 = vadd.f32 %v147_v8, %v89_v9  ;;  %v93_v12 = vadd.f32 %v147_v8, %v92_v10 }
  0x96   :  { %102 = vst.msk [vmem:[#allocation7] sm:$0xff] %vm101_vm1, %v90_v11 }
  0x97   :  { %103 = vst.msk [vmem:[#allocation7 + $0x8] sm:$0xff] %vm101_vm1, %v93_v12  ;;  %v95_v13 = vpop.f32.mrf.mxu2  ;;  %v98_v14 = vpop.f32.mrf.mxu3 }
  0x98   :  { %v96_v15 = vadd.f32 %v147_v8, %v95_v13  ;;  %v99_v16 = vadd.f32 %v147_v8, %v98_v14 }
  0x9a   :  { %104 = vst.msk [vmem:[#allocation7 + $0x10] sm:$0xff] %vm101_vm1, %v96_v15 }
  0x9b   :  { %105 = vst.msk [vmem:[#allocation7 + $0x18] sm:$0xff] %vm101_vm1, %v99_v16 }
  0x9c   :  { %118 = dma.vmem_to_hbm [thread:$0]  %s111_s25, 512, %s113_s28, [#allocation4], %s227_s20, %s227_s20, %s228_s21  }
  0x9d   :  { %224 = dma.done.wait [#allocation4], 512  }
  0x9e   :  { %225 = vsyncadd [#allocation4], 4294966784 }
  0x9f   :  { %123 = vsyncpa [#allocation3], 1 }
  0xa0   :  { %124 = vsyncpa [#allocation6], 1 }
  0xa1   :  { %125 = vsyncpa [#allocation4], 1 }

</bundles_post_ra>
